<compile_context>
chip_gen: v6e
topology: v6e:2x2x1
jax: 0.10.0
libtpu: 0.0.40
codegen_flags: <defaults>
</compile_context>

<pallas_src>
import functools

import jax
import jax.numpy as jnp
from jax.experimental import pallas as pl
from jax.experimental.pallas import tpu as pltpu


# ----------------------------------------------------------------------------
# Kernel
# ----------------------------------------------------------------------------
def _decoder_kernel(x_ref, w_ref, b_ref, o_ref):
    # x_ref: (TM, K)   VMEM  activations (resident across the N grid axis)
    # w_ref: (K, TN)   VMEM  weight, pre-transposed at init time
    # b_ref: (1, TN)   VMEM  bias slice (f32)
    # o_ref: (TM, TN)  VMEM  output tile
    x = x_ref[...]
    w = w_ref[...]
    if x.dtype != w.dtype:
        # bf16 fast path: cast the (small, resident) activation tile so the
        # MXU runs natively in bf16; accumulation stays f32 below.
        x = x.astype(w.dtype)
    acc = jnp.dot(x, w, preferred_element_type=jnp.float32)
    o_ref[...] = (acc + b_ref[...]).astype(o_ref.dtype)


# ----------------------------------------------------------------------------
# Helpers
# ----------------------------------------------------------------------------
def _round_up(v, m):
    return (v + m - 1) // m * m


def _cdiv(a, b):
    return (a + b - 1) // b


def prepare_decoder_params(weight, bias, *, param_dtype=jnp.float32):
    """One-time (init-time) parameter preparation. Do NOT call per forward.

    weight: [emb_dim, bottleneck_dim]  (native PyTorch nn.Linear layout)
    bias:   [emb_dim]
    param_dtype: jnp.float32 for exact nn.Linear semantics, jnp.bfloat16 to
                 halve the dominant HBM weight traffic (f32 accumulation kept).

    Returns (w_kn, bias_2d, emb_dim) where
      w_kn:    [bottleneck_dim, n_pad]  pre-transposed, emb_dim padded to 128
      bias_2d: [1, n_pad]               f32
    """
    d_out, d_in = weight.shape
    n_pad = _round_up(d_out, 128)
    w_kn = jnp.transpose(weight)                       # [K, emb_dim]
    if n_pad != d_out:
        w_kn = jnp.pad(w_kn, ((0, 0), (0, n_pad - d_out)))
        bias = jnp.pad(bias, (0, n_pad - d_out))
    w_kn = w_kn.astype(param_dtype)
    bias_2d = bias.reshape(1, n_pad).astype(jnp.float32)
    return w_kn, bias_2d, d_out


def _choose_tiles(B, K, n_pad, x_itemsize, w_itemsize, tile_m, tile_n, budget):
    tn = min(_round_up(tile_n, 128), n_pad)
    # v7x has 2 TensorCores: keep >= 2 N tiles when the problem allows it.
    if n_pad >= 256 and _cdiv(n_pad, tn) < 2:
        tn = _round_up(_cdiv(n_pad, 2), 128)

    def vmem_bytes(tm_, tn_):
        # Double-buffered inputs/outputs.
        return 2 * (tm_ * K * x_itemsize          # activations
                    + K * tn_ * w_itemsize        # weight tile
                    + tn_ * 4                     # bias tile
                    + tm_ * tn_ * 4)              # output tile

    tm = B  # resident activations -> weight streamed from HBM exactly once
    if vmem_bytes(tm, tn) > budget:
        tm = min(_round_up(tile_m, 8), _round_up(B, 8))
    while vmem_bytes(tm, tn) > budget and tm > 8:
        tm = max(8, _round_up(tm // 2, 8))
    while vmem_bytes(tm, tn) > budget and tn > 128:
        tn = max(128, _round_up(tn // 2, 128))
    return tm, tn, vmem_bytes(tm, tn)


# ----------------------------------------------------------------------------
# Forward
# ----------------------------------------------------------------------------
@functools.partial(jax.jit, static_argnums=(3,), static_argnames=("tile_m", "tile_n"))
def decoder_forward(x, w_kn, bias_2d, emb_dim, *, tile_m=1024, tile_n=2048):
    """y = x @ weight.T + bias  (nn.Linear semantics).

    x:       [B, bottleneck_dim]             float32 (or bf16)
    w_kn:    [bottleneck_dim, n_pad]         from prepare_decoder_params
    bias_2d: [1, n_pad]                      from prepare_decoder_params
    emb_dim: original output dim (n_pad may be larger, padded to 128)
    returns  [B, emb_dim]  in x.dtype
    """
    B, K = x.shape
    K_w, n_pad = w_kn.shape
    assert K == K_w, (K, K_w)
    assert bias_2d.shape == (1, n_pad)

    budget = 40 * 1024 * 1024  # conservative: fits v7x 64 MiB/TC with headroom
    tm, tn, needed = _choose_tiles(
        B, K, n_pad, x.dtype.itemsize, w_kn.dtype.itemsize, tile_m, tile_n, budget
    )

    m_tiles = 1 if tm == B else _cdiv(B, tm)
    n_tiles = _cdiv(n_pad, tn)
    # N on the OUTER (slow) axis: each weight tile is DMA'd exactly once; when
    # activations are resident (m_tiles == 1) x is DMA'd exactly once too.
    grid = (n_tiles, m_tiles)

    vmem_limit = int(min(56 * 1024 * 1024, max(32 * 1024 * 1024, needed + 8 * 1024 * 1024)))

    out = pl.pallas_call(
        _decoder_kernel,
        out_shape=jax.ShapeDtypeStruct((B, emb_dim), x.dtype),  # exact shape, no slice
        grid=grid,
        in_specs=[
            pl.BlockSpec((tm, K), lambda j, i: (i, 0)),   # activations (resident if i==0 only)
            pl.BlockSpec((K, tn), lambda j, i: (0, j)),   # weight [K, N] — streamed once
            pl.BlockSpec((1, tn), lambda j, i: (0, j)),   # bias slice
        ],
        out_specs=pl.BlockSpec((tm, tn), lambda j, i: (i, j)),
        compiler_params=pltpu.CompilerParams(
            dimension_semantics=("parallel", "parallel"),
            vmem_limit_bytes=vmem_limit,
        ),
    )(x, w_kn, bias_2d)
    return out


# ----------------------------------------------------------------------------
# Self-test
# ----------------------------------------------------------------------------
if __name__ == "__main__":
    # Shapes implied by the module: bottleneck_dim = params.emb_dim_autoenc,
    # emb_dim = params.emb_dim (small test sizes).
    batch = 8
    bottleneck_dim = 32
    emb_dim = 64

    key = jax.random.PRNGKey(0)
    kx, kw, kb = jax.random.split(key, 3)

    x = jax.random.normal(kx, (batch, bottleneck_dim), dtype=jnp.float32)
    weight = jax.random.normal(kw, (emb_dim, bottleneck_dim), dtype=jnp.float32) * 0.1
    bias = jax.random.normal(kb, (emb_dim,), dtype=jnp.float32) * 0.1

    y_ref = x @ weight.T + bias

    # --- exact f32 path (nn.Linear semantics) --------------------------------
    w_kn, b2, d_out = prepare_decoder_params(weight, bias, param_dtype=jnp.float32)
    y = jax.block_until_ready(decoder_forward(x, w_kn, b2, d_out))
    assert y.shape == (batch, emb_dim)
    assert jnp.allclose(y, y_ref, atol=1e-4, rtol=1e-4), "f32 path mismatch"

    # --- bf16-weight path (persistent cast at init, halves weight HBM bytes) -
    w_kn16, b2_16, d_out16 = prepare_decoder_params(weight, bias, param_dtype=jnp.bfloat16)
    y16 = jax.block_until_ready(decoder_forward(x, w_kn16, b2_16, d_out16))
    assert y16.shape == (batch, emb_dim)
    assert jnp.allclose(y16, y_ref, atol=5e-2, rtol=5e-2), "bf16 path mismatch"

    print("KERNEL_OK")
</pallas_src>

<mosaic_0001>
module attributes {stable_mosaic.version = 11 : i64} {
  func.func @_decoder_kernel(%arg0: i32, %arg1: i32, %arg2: memref<8x32xf32, #tpu.memory_space<vmem>>, %arg3: memref<32x128xf32, #tpu.memory_space<vmem>>, %arg4: memref<1x128xf32, #tpu.memory_space<vmem>>, %arg5: memref<8x128xf32, #tpu.memory_space<vmem>>) attributes {dimension_semantics = [#tpu.dimension_semantics<parallel>, #tpu.dimension_semantics<parallel>], iteration_bounds = array<i64: 1, 1>, scalar_prefetch = 0 : i64, scratch_operands = 0 : i64, tpu.core_type = #tpu.core_type<tc>, window_params = [{transform_indices = @transform_0, window_bounds = array<i64: 8, 32>}, {transform_indices = @transform_1, window_bounds = array<i64: 32, 128>}, {transform_indices = @transform_2, window_bounds = array<i64: 1, 128>}, {transform_indices = @transform_3, window_bounds = array<i64: 8, 128>}]} {
    %c0 = arith.constant 0 : index
    %c0_0 = arith.constant 0 : index
    %0 = vector.load %arg2[%c0, %c0_0] : memref<8x32xf32, #tpu.memory_space<vmem>>, vector<8x32xf32>
    %c0_1 = arith.constant 0 : index
    %c0_2 = arith.constant 0 : index
    %1 = vector.load %arg3[%c0_1, %c0_2] : memref<32x128xf32, #tpu.memory_space<vmem>>, vector<32x128xf32>
    %cst = arith.constant dense<0.000000e+00> : vector<8x128xf32>
    %2 = tpu.matmul %0, %1, %cst {dimension_numbers = #tpu.dot_dimension_numbers<[1], [0], [0], [1], [0, 0, 1, 1], [], []>} : vector<8x32xf32>, vector<32x128xf32>, vector<8x128xf32> -> vector<8x128xf32>
    %c0_3 = arith.constant 0 : index
    %c0_4 = arith.constant 0 : index
    %3 = vector.load %arg4[%c0_3, %c0_4] : memref<1x128xf32, #tpu.memory_space<vmem>>, vector<1x128xf32>
    %4 = vector.broadcast %3 : vector<1x128xf32> to vector<8x128xf32>
    %5 = arith.addf %2, %4 : vector<8x128xf32>
    %c0_5 = arith.constant 0 : index
    %c0_6 = arith.constant 0 : index
    %6 = vector.load %arg5[%c0_5, %c0_6] : memref<8x128xf32, #tpu.memory_space<vmem>>, vector<8x128xf32>
    tpu.vector_store %arg5[%c0_5, %c0_6], %5 {strides = array<i32>} : memref<8x128xf32, #tpu.memory_space<vmem>>, vector<8x128xf32>,
    return
  }
  func.func @transform_0(%arg0: i32, %arg1: i32) -> (i32, i32) {
    %c0_i32 = arith.constant 0 : i32
    %c0_i32_0 = arith.constant 0 : i32
    return %arg1, %c0_i32 : i32, i32
  }
  func.func @transform_1(%arg0: i32, %arg1: i32) -> (i32, i32) {
    %c0_i32 = arith.constant 0 : i32
    %c0_i32_0 = arith.constant 0 : i32
    return %c0_i32, %arg0 : i32, i32
  }
  func.func @transform_2(%arg0: i32, %arg1: i32) -> (i32, i32) {
    %c0_i32 = arith.constant 0 : i32
    %c0_i32_0 = arith.constant 0 : i32
    return %c0_i32, %arg0 : i32, i32
  }
  func.func @transform_3(%arg0: i32, %arg1: i32) -> (i32, i32) {
    %c0_i32 = arith.constant 0 : i32
    return %arg1, %arg0 : i32, i32
  }
}

</mosaic_0001>

<bundles_post_ra>
// kernel: decoder_forward.1
= control target key start
LH: loop header
LB: loop body
LE: loop exit
PB: predicated region body
PF: predicated region fallthrough
CT: control target
= control target key end

     0   :  { %8 = vsyncpa [#allocation3], 0  ;;  %s274_s0 = inlined_call_operand.hbm [shape: f32[8,32], index: 0, kind: input, shape index: {}]   ;;  %s275_s1 = inlined_call_operand.hbm [shape: f32[32,128], index: 1, kind: input, shape index: {}]   ;;  %s276_s2 = inlined_call_operand.vmem [shape: f32[1,128], index: 2, kind: input, shape index: {}]   ;;  %s277_s3 = inlined_call_operand.hbm [shape: f32[8,64], index: 3, kind: output, shape index: {}]  }
   0x1   :  { %9 = vsyncpa [#allocation6], 0 }
   0x2   :  { %10 = vsyncpa [#allocation4], 0  ;;  %s235_s12 = smov [#allocation2]   ;;  %s236_s14 = smov [#allocation5]  }
   0x3   :  { %s17_s13 = sshll.u32 %s235_s12, 4  ;;  %s26_s15 = sshll.u32 %s236_s14, 4  ;;  %s18_s13 = int_to_ptr.vmem [resolvable:$true] %s17_s13  ;;  %s27_s15 = int_to_ptr.vmem [resolvable:$true] %s26_s15 }
   0x4   :  { %s177_s16 = scalar_lea.vmem %s18_s13, 128  ;;  %p182_p1 = scmp.lt.s32.totalorder %s18_s13, %s18_s13 }
   0x5   :  { %p178_p0 = scmp.ne.s32.totalorder %s18_s13, %s177_s16  ;;  %p183_p2 = scmp.lt.s32.totalorder %s177_s16, %s177_s16 }
   0x7   :  { %p184_p3 = por %p183_p2, %p182_p1 }
   0x9   :  { %p185_p4 = pnand %p184_p3, %p178_p0 }
   0xb   :  { %188 = shalt.err (!%p185_p4)
}
   0xc   :  { %20 = dma.hbm_to_vmem [thread:$0]  %s274_s0, 128, %s18_s13, [#allocation3]  }
   0xd   :  { %s197_s19 = scalar_lea.vmem %s27_s15, 512  ;;  %p202_p6 = scmp.lt.s32.totalorder %s27_s15, %s27_s15 }
   0xe   :  { %p198_p5 = scmp.ne.s32.totalorder %s27_s15, %s197_s19  ;;  %p203_p7 = scmp.lt.s32.totalorder %s197_s19, %s197_s19 }
  0x10   :  { %p204_p8 = por %p203_p7, %p202_p6 }
  0x12   :  { %p205_p9 = pnand %p204_p8, %p198_p5 }
  0x14   :  { %208 = shalt.err (!%p205_p9)
}
  0x15   :  { %s237_s20 = smov 128   ;;  %s238_s21 = smov 8  }
  0x16   :  { %32 = dma.hbm_to_vmem [thread:$0]  %s275_s1, 512, %s27_s15, [#allocation6], %s237_s20, %s237_s20, %s238_s21  }
  0x17   :  { %229 = dma.done.wait [#allocation3], 128  }
  0x18   :  { %230 = vsyncadd [#allocation3], 4294967168 }
  0x19   :  { %231 = dma.done.wait [#allocation6], 512  }
  0x1a   :  { %232 = vsyncadd [#allocation6], 4294966784  ;;  %v239_v0 = vmov 0.0   ;;  %vm240_vm0 = vmmov 0   ;;  %v45_v1 = vld [vmem:[#allocation5 + $0x18] sm:$0xff]  ;;  %v44_v2 = vld [vmem:[#allocation5 + $0x10] sm:$0xff] }
  0x1b   :  { %151 = vmatprep.subr.mxu0 %v239_v0  ;;  %159 = vmatprep.mubr.msk.f32.mxu0 %vm240_vm0, %v239_v0  ;;  %v43_v3 = vld [vmem:[#allocation5 + $0x8] sm:$0xff]  ;;  %v42_v4 = vld [vmem:[#allocation5] sm:$0xff]  ;;  %v41_v5 = vld [vmem:[#allocation2] sm:$0xff]  ;;  %vm53_vm1 = vcmask 261120   ;;  %s241_s24 = smov [#allocation7]  }
  0x1c   :  { %152 = vmatpush3.msra.mxu0 %v45_v1  ;;  %v144_v6 = vld [vmem:[%s276_s2] ss:$0 sm:$0xff]  ;;  %s134_s25 = sshll.u32 %s241_s24, 4  ;;  %s135_s25 = int_to_ptr.vmem [resolvable:$true] %s134_s25 }
  0x1d   :  { %153 = vmatprep.subr.mxu0 %v239_v0  ;;  %s209_s26 = scalar_lea.vmem %s135_s25, 128  ;;  %p214_p11 = scmp.lt.s32.totalorder %s135_s25, %s135_s25 }
  0x1e   :  { %154 = vmatpush3.msra.mxu0 %v44_v2  ;;  %p210_p10 = scmp.ne.s32.totalorder %s135_s25, %s209_s26  ;;  %p215_p12 = scmp.lt.s32.totalorder %s209_s26, %s209_s26 }
  0x1f   :  { %155 = vmatprep.subr.mxu0 %v239_v0 }
  0x20   :  { %156 = vmatpush3.msra.mxu0 %v43_v3  ;;  %p216_p13 = por %p215_p12, %p214_p11 }
  0x21   :  { %157 = vmatprep.subr.mxu0 %v239_v0 }
  0x22   :  { %158 = vmatpush3.msra.mxu0 %v42_v4  ;;  %p217_p0 = pnand %p216_p13, %p210_p10 }
  0x23   :  { %160 = vmatmul.mubr.msk.f32.vlgmr.msra.gmra.mxu0 %vm53_vm1, %v41_v5 }
  0xe3   :  { %v123_v7 = vpop.f32.mrf.mxu0 }
  0xe4   :  { %v124_v8 = vadd.f32 %v144_v6, %v123_v7 }
  0xe5   :  { %v161_v9 = vpop.f32.mrf.mxu0 }
  0xe6   :  { %127 = vst [vmem:[#allocation7] sm:$0xff] %v124_v8 }
  0xe7   :  { %220 = shalt.err (!%p217_p0)
}
  0xe8   :  { %137 = dma.vmem_to_hbm [thread:$0]  %s135_s25, 128, %s277_s3, [#allocation4]  }
  0xe9   :  { %233 = dma.done.wait [#allocation4], 128  }
  0xea   :  { %234 = vsyncadd [#allocation4], 4294967168 }
  0xeb   :  { %141 = vsyncpa [#allocation3], 1 }
  0xec   :  { %142 = vsyncpa [#allocation6], 1 }
  0xed   :  { %143 = vsyncpa [#allocation4], 1 }

</bundles_post_ra>
